<compile_context>
chip_gen: v7x
topology: tpu7x:2x2x1
jax: 0.10.0
libtpu: 0.0.40
codegen_flags: <defaults>
</compile_context>

<pallas_src>
import jax
import jax.numpy as jnp
from jax import lax
from jax.experimental import pallas as pl
from jax.experimental.pallas import tpu as pltpu

_EPS = 1e-8  # matches torch.nn.CosineSimilarity default eps


def _round_up(a: int, b: int) -> int:
    return (a + b - 1) // b * b


def _make_similarity_kernel(temp: float):
    temp = float(temp)
    clamp = (temp * _EPS) ** 2  # (temp*eps)^2, clamp under the same rsqrt

    def kernel(x_ref, y_ref, xss_ref, yss_ref, o_ref):
        # x_ref:   (TM, Hp)   matmul-dtype tile
        # y_ref:   (TN, Hp)   matmul-dtype tile
        # xss_ref: (TM, 1)    f32, temp^2 * ||x_row||^2 (precomputed)
        # yss_ref: (1, TN)    f32, ||y_row||^2          (precomputed)
        # o_ref:   (TM, TN)   f32 output tile
        dots = lax.dot_general(
            x_ref[...], y_ref[...],
            dimension_numbers=(((1,), (1,)), ((), ())),   # x @ y.T, no transpose
            preferred_element_type=jnp.float32)           # MXU, f32 accumulation

        # temp^2 * ||x||^2 * ||y||^2 via (TM,1)*(1,TN) broadcast, clamped;
        # rsqrt gives 1 / (temp * max(||x||*||y||, eps))  (torch semantics).
        prod_sq = xss_ref[...] * yss_ref[...]             # (TM, TN)
        inv = lax.rsqrt(jnp.maximum(prod_sq, clamp))      # EUP slot
        o_ref[...] = (dots * inv).astype(o_ref.dtype)

    return kernel


def _vmem_estimate(tm: int, tn: int, hp: int, mm_bytes: int) -> int:
    # Double-buffered input/output tiles + (lane/sublane padded) norm tiles.
    return (2 * tm * hp * mm_bytes        # x tile
            + 2 * tn * hp * mm_bytes      # y tile
            + 2 * 4 * tm * tn             # f32 out tile
            + 2 * 4 * tm * 128            # x_ss (TM,1) -> lane-padded
            + 2 * 4 * 8 * tn)             # y_ss (1,TN) -> sublane-padded


def _pick_tm(b8: int, tn: int, hp: int, mm_bytes: int, budget: int):
    """Largest row tile (multiple of 8) whose VMEM estimate fits the budget."""
    last = None
    for cand in (2048, 1024, 512, 256, 128, 64, 32, 16, 8):
        tm = min(cand, b8)
        est = _vmem_estimate(tm, tn, hp, mm_bytes)
        last = (tm, est)
        if est <= budget:
            return tm, est
    return last  # nothing fits comfortably; smallest candidate


def similarity(x, y, temp: float, matmul_dtype=None):
    """Pallas equivalent of Similarity(temp)(x, y).

    Expects x: (B, 1, H), y: (1, By, H)  (the SimCSE usage pattern).
    Returns the (B, By) cosine-similarity matrix divided by temp (float32).

    matmul_dtype: optional reduced-precision dtype (e.g. jnp.bfloat16) for the
      MXU contraction; row norms always stay in float32.
    """
    assert x.ndim == 3 and y.ndim == 3, "expected (B,1,H) and (1,By,H)"
    assert x.shape[1] == 1 and y.shape[0] == 1, "expected broadcast pattern"
    assert x.shape[2] == y.shape[2], "hidden dims must match"

    x2d = x[:, 0, :]   # (B, H)
    y2d = y[0, :, :]   # (By, H)
    B, H = x2d.shape
    By = y2d.shape[0]

    temp = float(temp)
    temp_sq = temp * temp

    # Precompute row squared norms once, in f32, from the original data.
    xf = x2d.astype(jnp.float32)
    yf = y2d.astype(jnp.float32)
    x_ss = jnp.sum(xf * xf, axis=-1, keepdims=True) * temp_sq   # (B, 1)
    y_ss = jnp.sum(yf * yf, axis=-1)[None, :]                   # (1, By)

    # Optional reduced-precision MXU path (halves streamed bytes for f32 in).
    if matmul_dtype is not None and x2d.dtype != jnp.dtype(matmul_dtype):
        x2d = x2d.astype(matmul_dtype)
        y2d = y2d.astype(matmul_dtype)
    mm_bytes = jnp.dtype(x2d.dtype).itemsize

    # Generation-aware VMEM budget (v5e/v6e: 128 MiB, v7x: 64 MiB physical).
    try:
        phys_vmem = int(pltpu.get_tpu_info().vmem_capacity_bytes)
    except Exception:
        phys_vmem = 64 * 1024 * 1024   # conservative fallback (v7x-sized)
    budget = max(phys_vmem - (16 << 20), 32 << 20)   # leave compiler headroom

    # Tile sizes: TN lane-dense (multiple of 128); TM as large as the VMEM
    # budget allows -- TM is the lever that reduces streamed-y HBM traffic.
    TN = min(256, _round_up(By, 128))
    Hp = _round_up(H, 128)
    b8 = _round_up(B, 8)
    # TODO(synk): for very large H (>=4-8K) tile the contraction with a third
    # "arbitrary" grid axis + f32 accumulator; kept untiled here (SimCSE H~768/1024).
    TM, est = _pick_tm(b8, TN, Hp, mm_bytes, budget)

    Bp = _round_up(B, TM)
    Byp = _round_up(By, TN)

    if (Bp, Hp) != (B, H):
        x2d = jnp.pad(x2d, ((0, Bp - B), (0, Hp - H)))
    if (Byp, Hp) != (By, H):
        y2d = jnp.pad(y2d, ((0, Byp - By), (0, Hp - H)))
    if Bp != B:
        x_ss = jnp.pad(x_ss, ((0, Bp - B), (0, 0)))
    if Byp != By:
        y_ss = jnp.pad(y_ss, ((0, 0), (0, Byp - By)))

    gr = Bp // TM
    gc = Byp // TN

    # Grid ordering: rows-outer keeps the x tile resident across the streamed
    # y column tiles (minimum HBM traffic).  When there is only one row tile
    # the traffic is identical either way, so put the column axis first to
    # give the v7x megacore a parallel axis with >1 step.
    if gr == 1 and gc > 1:
        grid = (gc, gr)
        x_spec = pl.BlockSpec((TM, Hp), lambda j, i: (i, 0))
        y_spec = pl.BlockSpec((TN, Hp), lambda j, i: (j, 0))
        xss_spec = pl.BlockSpec((TM, 1), lambda j, i: (i, 0))
        yss_spec = pl.BlockSpec((1, TN), lambda j, i: (0, j))
        out_spec = pl.BlockSpec((TM, TN), lambda j, i: (i, j))
    else:
        grid = (gr, gc)
        x_spec = pl.BlockSpec((TM, Hp), lambda i, j: (i, 0))
        y_spec = pl.BlockSpec((TN, Hp), lambda i, j: (j, 0))
        xss_spec = pl.BlockSpec((TM, 1), lambda i, j: (i, 0))
        yss_spec = pl.BlockSpec((1, TN), lambda i, j: (0, j))
        out_spec = pl.BlockSpec((TM, TN), lambda i, j: (i, j))

    vmem_limit = int(min(phys_vmem, max(est + (8 << 20), 32 << 20)))

    out = pl.pallas_call(
        _make_similarity_kernel(temp),
        out_shape=jax.ShapeDtypeStruct((Bp, Byp), jnp.float32),
        grid_spec=pltpu.PrefetchScalarGridSpec(
            num_scalar_prefetch=0,
            grid=grid,
            in_specs=[x_spec, y_spec, xss_spec, yss_spec],
            out_specs=out_spec,
        ),
        compiler_params=pltpu.CompilerParams(
            # No cross-iteration state (norms are inputs), so both axes are
            # parallel -> megacore sharding on v7x on whichever axis is split.
            dimension_semantics=("parallel", "parallel"),
            vmem_limit_bytes=vmem_limit,
        ),
    )(x2d, y2d, x_ss, y_ss)

    return out[:B, :By]


def _reference(x, y, temp):
    # plain-JAX reference mimicking torch.nn.CosineSimilarity(dim=-1) / temp
    x = x.astype(jnp.float32)
    y = y.astype(jnp.float32)
    dot = jnp.sum(x * y, axis=-1)
    nx = jnp.sqrt(jnp.sum(x * x, axis=-1))
    ny = jnp.sqrt(jnp.sum(y * y, axis=-1))
    return dot / jnp.maximum(nx * ny, _EPS) / temp


if __name__ == "__main__":
    key = jax.random.PRNGKey(0)
    k1, k2 = jax.random.split(key)

    B, H = 8, 32          # small shapes: batch=8, hidden=32
    temp = 0.05           # typical SimCSE temperature

    z1 = jax.random.normal(k1, (B, H), dtype=jnp.float32)
    z2 = jax.random.normal(k2, (B, H), dtype=jnp.float32)

    # SimCSE-style broadcast: (B,1,H) vs (1,B,H) -> (B,B)
    x = z1[:, None, :]
    y = z2[None, :, :]

    out = jax.block_until_ready(similarity(x, y, temp))
    ref = _reference(x, y, temp)
    assert out.shape == (B, B)
    assert jnp.allclose(out, ref, atol=1e-4, rtol=1e-4), "mismatch vs reference"

    # Non-aligned, rectangular case exercising the padding + tiling path.
    B2, By2, H2 = 13, 9, 40
    a = jax.random.normal(k1, (B2, 1, H2), dtype=jnp.float32)
    b = jax.random.normal(k2, (1, By2, H2), dtype=jnp.float32)
    out2 = jax.block_until_ready(similarity(a, b, temp))
    ref2 = _reference(a, b, temp)
    assert out2.shape == (B2, By2)
    assert jnp.allclose(out2, ref2, atol=1e-4, rtol=1e-4), "mismatch (padded case)"

    # Multi-column-tile case (exercises the cols-first grid ordering) with the
    # optional bf16 MXU path; looser tolerance for the reduced-precision dots.
    B3, By3, H3 = 16, 384, 96
    c = jax.random.normal(k1, (B3, 1, H3), dtype=jnp.float32)
    d = jax.random.normal(k2, (1, By3, H3), dtype=jnp.float32)
    out3 = jax.block_until_ready(similarity(c, d, temp, matmul_dtype=jnp.bfloat16))
    ref3 = _reference(c, d, temp)
    assert out3.shape == (B3, By3)
    assert jnp.allclose(out3, ref3, atol=0.2, rtol=0.05), "mismatch (bf16 path)"

    print("KERNEL_OK")
</pallas_src>

<mosaic_0001>
module attributes {stable_mosaic.version = 11 : i64} {
  func.func @kernel(%arg0: i32, %arg1: i32, %arg2: memref<8x128xf32, #tpu.memory_space<vmem>>, %arg3: memref<128x128xf32, #tpu.memory_space<vmem>>, %arg4: memref<8x1xf32, #tpu.memory_space<vmem>>, %arg5: memref<1x128xf32, #tpu.memory_space<vmem>>, %arg6: memref<8x128xf32, #tpu.memory_space<vmem>>) attributes {dimension_semantics = [#tpu.dimension_semantics<parallel>, #tpu.dimension_semantics<parallel>], iteration_bounds = array<i64: 1, 1>, scalar_prefetch = 0 : i64, scratch_operands = 0 : i64, tpu.core_type = #tpu.core_type<tc>, window_params = [{transform_indices = @transform_0, window_bounds = array<i64: 8, 128>}, {transform_indices = @transform_1, window_bounds = array<i64: 128, 128>}, {transform_indices = @transform_2, window_bounds = array<i64: 8, 1>}, {transform_indices = @transform_3, window_bounds = array<i64: 1, 128>}, {transform_indices = @transform_4, window_bounds = array<i64: 8, 128>}]} {
    %c0 = arith.constant 0 : index
    %c0_0 = arith.constant 0 : index
    %0 = vector.load %arg2[%c0, %c0_0] : memref<8x128xf32, #tpu.memory_space<vmem>>, vector<8x128xf32>
    %c0_1 = arith.constant 0 : index
    %c0_2 = arith.constant 0 : index
    %1 = vector.load %arg3[%c0_1, %c0_2] : memref<128x128xf32, #tpu.memory_space<vmem>>, vector<128x128xf32>
    %cst = arith.constant dense<0.000000e+00> : vector<8x128xf32>
    %2 = tpu.matmul %0, %1, %cst {dimension_numbers = #tpu.dot_dimension_numbers<[1], [1], [0], [0], [0, 0, 1, 0], [], []>} : vector<8x128xf32>, vector<128x128xf32>, vector<8x128xf32> -> vector<8x128xf32>
    %c0_3 = arith.constant 0 : index
    %c0_4 = arith.constant 0 : index
    %3 = vector.load %arg4[%c0_3, %c0_4] : memref<8x1xf32, #tpu.memory_space<vmem>>, vector<8x1xf32>
    %c0_5 = arith.constant 0 : index
    %c0_6 = arith.constant 0 : index
    %4 = vector.load %arg5[%c0_5, %c0_6] : memref<1x128xf32, #tpu.memory_space<vmem>>, vector<1x128xf32>
    %5 = vector.broadcast %3 : vector<8x1xf32> to vector<8x128xf32>
    %6 = vector.broadcast %4 : vector<1x128xf32> to vector<8x128xf32>
    %7 = arith.mulf %5, %6 : vector<8x128xf32>
    %cst_7 = arith.constant 2.500000e-19 : f32
    %8 = vector.broadcast %cst_7 : f32 to vector<8x128xf32>
    %9 = arith.maximumf %7, %8 : vector<8x128xf32>
    %10 = math.rsqrt %9 : vector<8x128xf32>
    %11 = arith.mulf %2, %10 : vector<8x128xf32>
    %c0_8 = arith.constant 0 : index
    %c0_9 = arith.constant 0 : index
    %12 = vector.load %arg6[%c0_8, %c0_9] : memref<8x128xf32, #tpu.memory_space<vmem>>, vector<8x128xf32>
    tpu.vector_store %arg6[%c0_8, %c0_9], %11 {strides = array<i32>} : memref<8x128xf32, #tpu.memory_space<vmem>>, vector<8x128xf32>,
    return
  }
  func.func @transform_0(%arg0: i32, %arg1: i32) -> (i32, i32) {
    %c0_i32 = arith.constant 0 : i32
    %c0_i32_0 = arith.constant 0 : i32
    return %arg0, %c0_i32 : i32, i32
  }
  func.func @transform_1(%arg0: i32, %arg1: i32) -> (i32, i32) {
    %c0_i32 = arith.constant 0 : i32
    %c0_i32_0 = arith.constant 0 : i32
    return %arg1, %c0_i32 : i32, i32
  }
  func.func @transform_2(%arg0: i32, %arg1: i32) -> (i32, i32) {
    %c0_i32 = arith.constant 0 : i32
    %c0_i32_0 = arith.constant 0 : i32
    return %arg0, %c0_i32 : i32, i32
  }
  func.func @transform_3(%arg0: i32, %arg1: i32) -> (i32, i32) {
    %c0_i32 = arith.constant 0 : i32
    %c0_i32_0 = arith.constant 0 : i32
    return %c0_i32, %arg1 : i32, i32
  }
  func.func @transform_4(%arg0: i32, %arg1: i32) -> (i32, i32) {
    %c0_i32 = arith.constant 0 : i32
    return %arg0, %arg1 : i32, i32
  }
}

</mosaic_0001>

<bundles_post_ra>
// kernel: tpu_custom_call.1
= control target key start
LH: loop header
LB: loop body
LE: loop exit
PB: predicated region body
PF: predicated region fallthrough
CT: control target
= control target key end

     0   :  { %9 = vsyncpa [#allocation3], 0  ;;  %s354_s0 = inlined_call_operand.vmem [shape: f32[8,128], index: 0, kind: input, shape index: {}]   ;;  %s355_s1 = inlined_call_operand.hbm [shape: f32[128,128], index: 1, kind: input, shape index: {}]   ;;  %s356_s2 = inlined_call_operand.vmem [shape: f32[8,1], index: 2, kind: input, shape index: {}]   ;;  %s357_s3 = inlined_call_operand.vmem [shape: f32[1,128], index: 3, kind: input, shape index: {}]   ;;  %s358_s4 = inlined_call_operand.hbm [shape: f32[8,128], index: 4, kind: output, shape index: {}]  }
   0x1   :  { %10 = vsyncpa [#allocation4], 0  ;;  %s288_s15 = smov [#allocation2]   ;;  %s240_s19 = scalar_lea.hbm %s355_s1, 2048 }
   0x2   :  { %s18_s16 = sshll.u32 %s288_s15, 4  ;;  %p241_p0 = scmp.ne.s32.totalorder %s355_s1, %s240_s19  ;;  %s19_s16 = int_to_ptr.vmem [resolvable:$true] %s18_s16 }
   0x3   :  { %p244_p1 = scmp.lt.u32.totalorder %s240_s19, %s355_s1 }
   0x5   :  { %p246_p2 = pnand %p244_p1, %p241_p0 }
   0x7   :  { %249 = shalt.err (!%p246_p2)
}
   0x8   :  { %s250_s24 = scalar_lea.vmem %s19_s16, 2048  ;;  %p255_p4 = scmp.lt.s32.totalorder %s19_s16, %s19_s16 }
   0x9   :  { %p251_p3 = scmp.ne.s32.totalorder %s19_s16, %s250_s24  ;;  %p256_p5 = scmp.lt.s32.totalorder %s250_s24, %s250_s24 }
   0xb   :  { %p257_p6 = por %p256_p5, %p255_p4 }
   0xd   :  { %p258_p7 = pnand %p257_p6, %p251_p3 }
   0xf   :  { %261 = shalt.err (!%p258_p7)
}
  0x10   :  { %s289_s25 = smov 128   ;;  %s290_s26 = smov 8  }
  0x11   :  { %24 = dma.hbm_to_vmem [thread:$0]  %s355_s1, 2048, %s19_s16, [#allocation3], %s289_s25, %s289_s25, %s290_s26  }
  0x12   :  { %284 = dma.done.wait [#allocation3], 2048  }
  0x13   :  { %285 = vsyncadd [#allocation3], 4294965248  ;;  %v291_v0 = vmov 0.0|0.0   ;;  %vm292_vm0 = vmmov 0   ;;  %v293_v1 = vmov 0.0   ;;  %v294_v2 = vmov 0  }
  0x14   :  { %205 = vmatprep.subr.bf16.mxu0 %v291_v0  ;;  %202 = vmatprep.mubr.msk.f32.mxu0 %vm292_vm0, %v293_v1  ;;  %v33_v3 = vld [vmem:[#allocation2] sm:$0xff]  ;;  %v34_v4 = vld [vmem:[#allocation2 + $0x8] sm:$0xff]  ;;  %v35_v6 = vld [vmem:[#allocation2 + $0x10] sm:$0xff]  ;;  %s295_s7 = smov [#allocation5]  }
  0x15   :  { %237 = vset.pattern.permute.xlu0 %v294_v2  ;;  %v206_v5 = vpack.c.bf16 %v34_v4, %v33_v3  ;;  %v36_v7 = vld [vmem:[#allocation2 + $0x18] sm:$0xff]  ;;  %v119_v8 = vld [vmem:[%s356_s2] sm:$0xff]  ;;  %v38_v11 = vld [vmem:[#allocation2 + $0x28] sm:$0xff]  ;;  %s143_s8 = sshll.u32 %s295_s7, 4  ;;  %s144_s8 = int_to_ptr.vmem [resolvable:$true] %s143_s8 }
  0x16   :  { %123 = vperm.xlu0 %237, %v119_v8   ;;  %v209_v9 = vpack.c.bf16 %v36_v7, %v35_v6  ;;  %v37_v10 = vld [vmem:[#allocation2 + $0x20] sm:$0xff]  ;;  %v39_v13 = vld [vmem:[#allocation2 + $0x30] sm:$0xff]  ;;  %v40_v14 = vld [vmem:[#allocation2 + $0x38] sm:$0xff]  ;;  %s262_s9 = scalar_lea.vmem %s144_s8, 128  ;;  %p267_p9 = scmp.lt.s32.totalorder %s144_s8, %s144_s8 }
  0x17   :  { %207 = vmatpush3.bf16.xpose.msra.mxu0 %v206_v5  ;;  %v212_v12 = vpack.c.bf16 %v38_v11, %v37_v10  ;;  %v215_v15 = vpack.c.bf16 %v40_v14, %v39_v13  ;;  %v41_v16 = vld [vmem:[#allocation2 + $0x40] sm:$0xff]  ;;  %v42_v17 = vld [vmem:[#allocation2 + $0x48] sm:$0xff]  ;;  %v43_v19 = vld [vmem:[#allocation2 + $0x50] sm:$0xff]  ;;  %p263_p8 = scmp.ne.s32.totalorder %s144_s8, %s262_s9  ;;  %p268_p10 = scmp.lt.s32.totalorder %s262_s9, %s262_s9 }
  0x18   :  { %208 = vmatprep.subr.bf16.mxu0 %v291_v0  ;;  %v218_v18 = vpack.c.bf16 %v42_v17, %v41_v16  ;;  %v44_v20 = vld [vmem:[#allocation2 + $0x58] sm:$0xff]  ;;  %v45_v22 = vld [vmem:[#allocation2 + $0x60] sm:$0xff]  ;;  %v46_v23 = vld [vmem:[#allocation2 + $0x68] sm:$0xff] }
  0x19   :  { %v221_v21 = vpack.c.bf16 %v44_v20, %v43_v19  ;;  %v224_v24 = vpack.c.bf16 %v46_v23, %v45_v22  ;;  %v47_v25 = vld [vmem:[#allocation2 + $0x70] sm:$0xff]  ;;  %v48_v26 = vld [vmem:[#allocation2 + $0x78] sm:$0xff]  ;;  %v32_v28 = vld [vmem:[%s354_s0] sm:$0xff]  ;;  %p269_p11 = por %p268_p10, %p267_p9 }
  0x1a   :  { %v227_v27 = vpack.c.bf16 %v48_v26, %v47_v25  ;;  %v152_v29 = vld [vmem:[%s357_s3] ss:$0 sm:$0xff] }
  0x1b   :  { %p270_p12 = pnand %p269_p11, %p263_p8 }
  0x1f   :  { %210 = vmatpush3.bf16.xpose.msra.mxu0 %v209_v9 }
  0x20   :  { %211 = vmatprep.subr.bf16.mxu0 %v291_v0 }
  0x27   :  { %213 = vmatpush3.bf16.xpose.msra.mxu0 %v212_v12 }
  0x28   :  { %214 = vmatprep.subr.bf16.mxu0 %v291_v0 }
  0x2f   :  { %216 = vmatpush3.bf16.xpose.msra.mxu0 %v215_v15 }
  0x30   :  { %217 = vmatprep.subr.bf16.mxu0 %v291_v0 }
  0x37   :  { %219 = vmatpush3.bf16.xpose.msra.mxu0 %v218_v18 }
  0x38   :  { %220 = vmatprep.subr.bf16.mxu0 %v291_v0 }
  0x3f   :  { %222 = vmatpush3.bf16.xpose.msra.mxu0 %v221_v21 }
  0x40   :  { %223 = vmatprep.subr.bf16.mxu0 %v291_v0 }
  0x47   :  { %225 = vmatpush3.bf16.xpose.msra.mxu0 %v224_v24 }
  0x48   :  { %226 = vmatprep.subr.bf16.mxu0 %v291_v0 }
  0x4f   :  { %228 = vmatpush3.bf16.xpose.msra.mxu0 %v227_v27 }
  0x56   :  { %203 = vmatmul.mubr.f32.vlgmr.msra.gmra.mrb[0].mxu0 %v32_v28 }
  0x95   :  { %v124_v30 = vpop.permute.xlu0 %123 }
  0x96   :  { %v132_v31 = vmul.f32 %v152_v29, %v124_v30 }
  0x98   :  { %v133_v32 = vmax.f32 %v132_v31, 2.5e-19 }
  0x9a   :  { %238 = vrsqrt.f32 %v133_v32 }
  0xa4   :  { %v239_v33 = vpop.eup %238 }
 0x129   :  { %v115_v34 = vpop.f32.mrb[0].mxu0 }
 0x12a   :  { %v135_v35 = vmul.f32 %v239_v33, %v115_v34  ;;  %v204_v36 = vpop.f32.mrb[1].mxu0 }
 0x12c   :  { %136 = vst [vmem:[#allocation5] sm:$0xff] %v135_v35 }
 0x12d   :  { %273 = shalt.err (!%p270_p12)
}
 0x12e   :  { %s274_s10 = scalar_lea.hbm %s358_s4, 128 }
 0x12f   :  { %p275_p13 = scmp.ne.s32.totalorder %s358_s4, %s274_s10  ;;  %p278_p0 = scmp.lt.u32.totalorder %s274_s10, %s358_s4 }
 0x131   :  { %p280_p1 = pnand %p278_p0, %p275_p13 }
 0x133   :  { %283 = shalt.err (!%p280_p1)
}
 0x134   :  { %146 = dma.vmem_to_hbm [thread:$0]  %s144_s8, 128, %s358_s4, [#allocation4]  }
 0x135   :  { %286 = dma.done.wait [#allocation4], 128  }
 0x136   :  { %287 = vsyncadd [#allocation4], 4294967168 }
 0x137   :  { %150 = vsyncpa [#allocation3], 1 }
 0x138   :  { %151 = vsyncpa [#allocation4], 1 }

</bundles_post_ra>
